<compile_context>
chip_gen: v6e
topology: v6e:2x2x1
jax: 0.10.0
libtpu: 0.0.40
codegen_flags: <defaults>
</compile_context>

<pallas_src>
import jax
import jax.numpy as jnp
from jax.experimental import pallas as pl
from jax.experimental.pallas import tpu as pltpu


def _round_up(x, m):
    return ((x + m - 1) // m) * m


def _vmem_capacity_bytes():
    try:
        return int(pltpu.get_tpu_info().vmem_capacity_bytes)
    except Exception:
        return 128 * 1024 * 1024


# ---------------------------------------------------------------------------
# Kernel 1: gate (router) logits   logits[T, E_pad] = x[T, H] @ Wg^T
# Tiled over T (parallel). Output stays in the model dtype (TRT-LLM cublas_mm parity).
# ---------------------------------------------------------------------------
def _gate_kernel(x_ref, wg_ref, logits_ref):
    logits_ref[...] = jnp.dot(
        x_ref[...], wg_ref[...], preferred_element_type=jnp.float32
    ).astype(logits_ref.dtype)


def gate_logits(x_p, w_gate_t_p, tm):
    t_pad, h = x_p.shape
    e_pad = w_gate_t_p.shape[1]
    return pl.pallas_call(
        _gate_kernel,
        out_shape=jax.ShapeDtypeStruct((t_pad, e_pad), x_p.dtype),
        grid_spec=pl.GridSpec(
            grid=(t_pad // tm,),
            in_specs=[
                pl.BlockSpec((tm, h), lambda t: (t, 0)),
                # Constant-index weight block (small: H x E_pad).
                pl.BlockSpec((h, e_pad), lambda t: (0, 0)),
            ],
            out_specs=pl.BlockSpec((tm, e_pad), lambda t: (t, 0)),
        ),
        compiler_params=pltpu.CompilerParams(
            dimension_semantics=("parallel",)),
    )(x_p, w_gate_t_p)


# ---------------------------------------------------------------------------
# Kernel 2: MoE experts.
# grid = (token_tiles, E_grid, I_chunks); E_grid = min(E, T*top_k) walks the compacted
# active-expert list (scalar prefetch); I_chunks streams gate/up/down weight chunks so
# the per-step VMEM working set fits even on v7x (64 MiB/TC).
# ---------------------------------------------------------------------------
def _moe_kernel(eids_ref, nact_ref, x_ref, rw_ref, w1_ref, w3_ref, w2_ref,
                o_ref, acc_ref):
    e = pl.program_id(1)
    ic = pl.program_id(2)

    @pl.when((e == 0) & (ic == 0))
    def _init():
        acc_ref[...] = jnp.zeros_like(acc_ref)

    @pl.when(e < nact_ref[0])
    def _compute():
        x = x_ref[...]                                                   # (TM, H)
        g = jnp.dot(x, w1_ref[0], preferred_element_type=jnp.float32)    # gate_proj (TM, IC)
        u = jnp.dot(x, w3_ref[0], preferred_element_type=jnp.float32)    # up_proj   (TM, IC)
        hch = (g * jax.nn.sigmoid(g)) * u                                # SwiGLU chunk, f32

        # Routing-weight column for this expert: masked lane reduce over the resident
        # lane-dense (TM, E_pad) block.
        eid = eids_ref[e]
        lanes = jax.lax.broadcasted_iota(jnp.int32, rw_ref.shape, 1)
        rw_col = jnp.sum(jnp.where(lanes == eid, rw_ref[...], 0.0),
                         axis=-1, keepdims=True)                         # (TM, 1) f32

        d = jnp.dot(hch.astype(x.dtype), w2_ref[0],
                    preferred_element_type=jnp.float32)                  # down_proj chunk (TM, H)
        acc_ref[...] += rw_col * d                                       # scale f32 output

    @pl.when((e == pl.num_programs(1) - 1) & (ic == pl.num_programs(2) - 1))
    def _store():
        o_ref[...] = acc_ref[...].astype(o_ref.dtype)


def _weight_block_spec(shape, index_map, nbuf):
    if nbuf > 2:
        try:
            return pl.BlockSpec(shape, index_map, pipeline_mode=pl.Buffered(nbuf))
        except Exception:
            pass  # fall back to the default double-buffering
    return pl.BlockSpec(shape, index_map)


def moe_experts(expert_ids, n_active, x_p, rw_p, w1_t, w3_t, w2_t, tm, e_grid):
    t_pad, h = x_p.shape
    i_dim = w1_t.shape[2]
    e_pad = rw_p.shape[1]

    wbytes = jnp.dtype(w1_t.dtype).itemsize
    xbytes = jnp.dtype(x_p.dtype).itemsize

    budget = int(0.85 * _vmem_capacity_bytes())
    # Non-weight working set: double-buffered x/rw/out tiles + f32 accumulator + headroom.
    fixed = (2 * tm * h * xbytes          # x tiles
             + 2 * tm * e_pad * 4         # routing-weight tiles (f32)
             + tm * h * 4                 # f32 accumulator scratch
             + 2 * tm * h * xbytes        # output tiles
             + (4 << 20))                 # compiler/internal headroom

    # Largest intermediate-dim chunk (multiple of 128, dividing I) whose double-buffered
    # gate/up/down blocks fit the per-core VMEM budget.  If nothing fits we fall back to
    # the smallest chunk and clamp the limit to the budget (fail-soft).
    cands = [c for c in range(i_dim, 0, -128) if i_dim % c == 0] or [i_dim]
    i_chunk = cands[-1]
    for c in cands:
        if fixed + 2 * 3 * h * c * wbytes <= budget:
            i_chunk = c
            break
    n_ic = i_dim // i_chunk

    # Deepen weight pipelining to 3 buffers when it fits and there is reduction depth
    # to profit from it (mostly v5e/v6e which have 128 MiB VMEM headroom).
    nbuf = 2
    if e_grid * n_ic >= 3 and fixed + 3 * 3 * h * i_chunk * wbytes <= budget:
        nbuf = 3

    est = fixed + nbuf * 3 * h * i_chunk * wbytes
    vmem_limit = int(min(max(est, 32 << 20), budget))

    def w13_map(t, e, ic, eids, na):
        # Tail steps (e >= n_active) repeat the last streamed (expert, chunk) block so
        # their DMAs are skipped entirely (same block index as the previous step).
        icc = jnp.where(e < na[0], ic, jnp.int32(n_ic - 1))
        return (eids[e], 0, icc)

    def w2_map(t, e, ic, eids, na):
        icc = jnp.where(e < na[0], ic, jnp.int32(n_ic - 1))
        return (eids[e], icc, 0)

    return pl.pallas_call(
        _moe_kernel,
        out_shape=jax.ShapeDtypeStruct((t_pad, h), x_p.dtype),
        grid_spec=pltpu.PrefetchScalarGridSpec(
            num_scalar_prefetch=2,
            grid=(t_pad // tm, e_grid, n_ic),
            in_specs=[
                pl.BlockSpec((tm, h), lambda t, e, ic, eids, na: (t, 0)),      # x tile
                pl.BlockSpec((tm, e_pad), lambda t, e, ic, eids, na: (t, 0)),  # routing weights
                _weight_block_spec((1, h, i_chunk), w13_map, nbuf),            # gate_proj^T chunk
                _weight_block_spec((1, h, i_chunk), w13_map, nbuf),            # up_proj^T chunk
                _weight_block_spec((1, i_chunk, h), w2_map, nbuf),             # down_proj^T chunk
            ],
            out_specs=pl.BlockSpec((tm, h), lambda t, e, ic, eids, na: (t, 0)),
            scratch_shapes=[pltpu.VMEM((tm, h), jnp.float32)],
        ),
        compiler_params=pltpu.CompilerParams(
            dimension_semantics=("parallel", "arbitrary", "arbitrary"),
            vmem_limit_bytes=vmem_limit,
        ),
    )(expert_ids, n_active, x_p, rw_p, w1_t, w3_t, w2_t)


# ---------------------------------------------------------------------------
# Glue: Renormalize routing (top-k of logits, softmax over the selected logits)
# and active-expert compaction for the scalar-prefetch schedule.
# ---------------------------------------------------------------------------
def renormalize_routing(logits, top_k, num_experts):
    vals, idx = jax.lax.top_k(logits.astype(jnp.float32), top_k)       # [T, K]
    w = jax.nn.softmax(vals, axis=-1)                                   # [T, K]
    onehot = jax.nn.one_hot(idx, num_experts, dtype=jnp.float32)        # [T, K, E]
    return jnp.sum(onehot * w[..., None], axis=1)                       # [T, E] dense, 0 elsewhere


def compact_active_experts(dense_rw):
    """Returns (expert_ids[E] int32, n_active[1] int32): active expert ids first; tail
    positions repeat the last active id so their weight DMAs get skipped. If n_active
    is 0 the compute is fully pl.when-gated, so the fallback id is harmless."""
    num_experts = dense_rw.shape[1]
    active = jnp.any(dense_rw > 0.0, axis=0)                            # [E]
    n_active = jnp.sum(active.astype(jnp.int32))
    # jnp.argsort is stable -> deterministic active-expert ordering.
    order = jnp.argsort(jnp.logical_not(active).astype(jnp.int32)).astype(jnp.int32)
    last_active = order[jnp.maximum(n_active - 1, 0)]
    pos = jnp.arange(num_experts, dtype=jnp.int32)
    expert_ids = jnp.where(pos < n_active, order, last_active)
    return expert_ids, jnp.reshape(n_active, (1,))


def _pick_tm(t, dtype, max_token_tile):
    itemsize = jnp.dtype(dtype).itemsize
    sub = {1: 32, 2: 16}.get(itemsize, 8)        # dtype-native sublane packing
    t_min = _round_up(max(t, 1), sub)
    if t_min <= max_token_tile:
        return t_min                              # single token tile: weights streamed once
    cands = [c for c in (1024, 768, 512, 384, 256, 128, 64, 32, 16)
             if c <= max_token_tile and c % sub == 0]
    if not cands:
        return _round_up(max_token_tile, sub)
    best, best_cost = cands[0], None
    for c in cands:
        t_pad = _round_up(t, c)
        n_tiles = t_pad // c
        waste = (t_pad - t) / t
        cost = n_tiles * (1.0 + waste)            # weight re-streams + padded-row MXU work
        if best_cost is None or cost < best_cost:
            best, best_cost = c, cost
    return best


def qwen3_moe_forward(hidden_states, params, top_k, max_token_tile=512):
    orig_shape = hidden_states.shape
    h = orig_shape[-1]
    x = hidden_states.reshape(-1, h)                     # [T, H]
    t = x.shape[0]
    n_experts, _, i_dim = params["w1_t"].shape
    e_pad = _round_up(n_experts, 128)                    # lane-dense gate output / rw block

    tm = _pick_tm(t, x.dtype, max_token_tile)
    t_pad = _round_up(t, tm)

    x_p = jnp.pad(x, ((0, t_pad - t), (0, 0)))
    gw = params["gate_w_t"]                              # [H, E]
    gw_p = jnp.pad(gw, ((0, 0), (0, e_pad - gw.shape[1])))

    logits = gate_logits(x_p, gw_p, tm)[:t, :n_experts]  # [T, E] in model dtype (TRT-LLM parity)
    rw = renormalize_routing(logits, top_k, n_experts)   # [T, E] f32
    expert_ids, n_active = compact_active_experts(rw)
    rw_p = jnp.pad(rw, ((0, t_pad - t), (0, e_pad - n_experts)))

    # Pad the intermediate dim to a lane multiple if needed (zero gate/up/down columns
    # contribute exactly zero to the output).
    w1_t, w3_t, w2_t = params["w1_t"], params["w3_t"], params["w2_t"]
    i_pad = _round_up(i_dim, 128)
    if i_pad != i_dim:
        w1_t = jnp.pad(w1_t, ((0, 0), (0, 0), (0, i_pad - i_dim)))
        w3_t = jnp.pad(w3_t, ((0, 0), (0, 0), (0, i_pad - i_dim)))
        w2_t = jnp.pad(w2_t, ((0, 0), (0, i_pad - i_dim), (0, 0)))

    e_grid = min(n_experts, t * top_k)                   # static upper bound on active experts
    out = moe_experts(expert_ids, n_active, x_p, rw_p, w1_t, w3_t, w2_t, tm, e_grid)
    return out[:t].reshape(orig_shape)


# ---------------------------------------------------------------------------
# Pure-JAX reference (same math, for self-check)
# ---------------------------------------------------------------------------
def qwen3_moe_reference(hidden_states, params, top_k):
    orig_shape = hidden_states.shape
    h = orig_shape[-1]
    x = hidden_states.reshape(-1, h)
    logits = jnp.dot(x, params["gate_w_t"],
                     preferred_element_type=jnp.float32).astype(x.dtype)
    n_experts = params["w1_t"].shape[0]
    rw = renormalize_routing(logits, top_k, n_experts)   # [T, E]
    acc = jnp.zeros(x.shape, jnp.float32)
    for e in range(n_experts):
        g = jnp.dot(x, params["w1_t"][e], preferred_element_type=jnp.float32)
        u = jnp.dot(x, params["w3_t"][e], preferred_element_type=jnp.float32)
        hh = (g * jax.nn.sigmoid(g)) * u
        o = jnp.dot(hh.astype(x.dtype), params["w2_t"][e],
                    preferred_element_type=jnp.float32)
        acc = acc + rw[:, e:e + 1] * o
    return acc.astype(x.dtype).reshape(orig_shape)


# ---------------------------------------------------------------------------
# Parameter init (deterministic, synthetic)
# ---------------------------------------------------------------------------
def init_params(key, hidden, moe_inter, num_experts, dtype):
    k1, k2, k3, k4 = jax.random.split(key, 4)
    s_h = 1.0 / (hidden ** 0.5)
    s_i = 1.0 / (moe_inter ** 0.5)
    # gate: nn.Parameter((num_experts, hidden)); kernel consumes its transpose [H, E]
    gate_w = jax.random.normal(k1, (num_experts, hidden), jnp.float32) * s_h
    # experts (torch convention): w1/w3 [E, I, H] (gate/up proj), w2 [E, H, I] (down proj)
    w1 = jax.random.normal(k2, (num_experts, moe_inter, hidden), jnp.float32) * s_h
    w3 = jax.random.normal(k3, (num_experts, moe_inter, hidden), jnp.float32) * s_h
    w2 = jax.random.normal(k4, (num_experts, hidden, moe_inter), jnp.float32) * s_i
    return {
        "gate_w_t": gate_w.T.astype(dtype),                       # [H, E]
        "w1_t": jnp.transpose(w1, (0, 2, 1)).astype(dtype),       # [E, H, I]
        "w3_t": jnp.transpose(w3, (0, 2, 1)).astype(dtype),       # [E, H, I]
        "w2_t": jnp.transpose(w2, (0, 2, 1)).astype(dtype),       # [E, I, H]
    }


if __name__ == "__main__":
    # Small Qwen3-MoE-like config
    batch, seq = 2, 8
    hidden_size = 128
    moe_intermediate_size = 128
    num_experts = 8
    top_k = 2
    dtype = jnp.bfloat16

    key = jax.random.PRNGKey(0)
    kx, kp = jax.random.split(key)
    hidden_states = (jax.random.normal(kx, (batch, seq, hidden_size), jnp.float32)
                     .astype(dtype))
    params = init_params(kp, hidden_size, moe_intermediate_size, num_experts, dtype)

    out = qwen3_moe_forward(hidden_states, params, top_k)
    out = jax.block_until_ready(out)
    assert out.shape == hidden_states.shape and out.dtype == dtype

    ref = jax.block_until_ready(qwen3_moe_reference(hidden_states, params, top_k))
    err = jnp.max(jnp.abs(out.astype(jnp.float32) - ref.astype(jnp.float32)))
    assert float(err) < 5e-2, f"mismatch vs reference: {float(err)}"

    print("KERNEL_OK")
</pallas_src>

<mosaic_0001>
module attributes {stable_mosaic.version = 11 : i64} {
  func.func @_gate_kernel(%arg0: i32, %arg1: memref<16x128xbf16, #tpu.memory_space<vmem>>, %arg2: memref<128x128xbf16, #tpu.memory_space<vmem>>, %arg3: memref<16x128xbf16, #tpu.memory_space<vmem>>) attributes {dimension_semantics = [#tpu.dimension_semantics<parallel>], iteration_bounds = array<i64: 1>, scalar_prefetch = 0 : i64, scratch_operands = 0 : i64, tpu.core_type = #tpu.core_type<tc>, window_params = [{transform_indices = @transform_0, window_bounds = array<i64: 16, 128>}, {pipeline_mode = #tpu.pipeline_mode<synchronous>, transform_indices = @transform_1, window_bounds = array<i64: 128, 128>}, {transform_indices = @transform_2, window_bounds = array<i64: 16, 128>}]} {
    %c0 = arith.constant 0 : index
    %c0_0 = arith.constant 0 : index
    %0 = vector.load %arg1[%c0, %c0_0] : memref<16x128xbf16, #tpu.memory_space<vmem>>, vector<16x128xbf16>
    %c0_1 = arith.constant 0 : index
    %c0_2 = arith.constant 0 : index
    %1 = vector.load %arg2[%c0_1, %c0_2] : memref<128x128xbf16, #tpu.memory_space<vmem>>, vector<128x128xbf16>
    %cst = arith.constant dense<0.000000e+00> : vector<16x128xf32>
    %2 = tpu.matmul %0, %1, %cst {dimension_numbers = #tpu.dot_dimension_numbers<[1], [0], [0], [1], [0, 0, 1, 1], [], []>} : vector<16x128xbf16>, vector<128x128xbf16>, vector<16x128xf32> -> vector<16x128xf32>
    %3 = arith.truncf %2 : vector<16x128xf32> to vector<16x128xbf16>
    %c0_3 = arith.constant 0 : index
    %c0_4 = arith.constant 0 : index
    %4 = vector.load %arg3[%c0_3, %c0_4] : memref<16x128xbf16, #tpu.memory_space<vmem>>, vector<16x128xbf16>
    tpu.vector_store %arg3[%c0_3, %c0_4], %3 {strides = array<i32>} : memref<16x128xbf16, #tpu.memory_space<vmem>>, vector<16x128xbf16>,
    return
  }
  func.func @transform_0(%arg0: i32) -> (i32, i32) {
    %c0_i32 = arith.constant 0 : i32
    %c0_i32_0 = arith.constant 0 : i32
    return %arg0, %c0_i32 : i32, i32
  }
  func.func @transform_1(%arg0: i32) -> (i32, i32) {
    %c0_i32 = arith.constant 0 : i32
    %c0_i32_0 = arith.constant 0 : i32
    %c0_i32_1 = arith.constant 0 : i32
    return %c0_i32, %c0_i32_0 : i32, i32
  }
  func.func @transform_2(%arg0: i32) -> (i32, i32) {
    %c0_i32 = arith.constant 0 : i32
    %c0_i32_0 = arith.constant 0 : i32
    return %arg0, %c0_i32 : i32, i32
  }
}

</mosaic_0001>

<bundles_post_ra>
// kernel: tpu_custom_call.1
= control target key start
LH: loop header
LB: loop body
LE: loop exit
PB: predicated region body
PF: predicated region fallthrough
CT: control target
= control target key end

     0   :  { %7 = vsyncpa [#allocation3], 0  ;;  %s351_s0 = inlined_call_operand.hbm [shape: bf16[16,128], index: 0, kind: input, shape index: {}]   ;;  %s352_s1 = inlined_call_operand.hbm [shape: bf16[128,128], index: 1, kind: input, shape index: {}]   ;;  %s353_s2 = inlined_call_operand.hbm [shape: bf16[16,128], index: 2, kind: output, shape index: {}]  }
   0x1   :  { %8 = vsyncpa [#allocation6], 0 }
   0x2   :  { %9 = vsyncpa [#allocation4], 0  ;;  %s311_s9 = smov [#allocation2]  }
   0x3   :  { %s15_s10 = sshll.u32 %s311_s9, 4  ;;  %s16_s10 = int_to_ptr.vmem [resolvable:$true] %s15_s10 }
   0x4   :  { %s253_s11 = scalar_lea.vmem %s16_s10, 128  ;;  %p258_p1 = scmp.lt.s32.totalorder %s16_s10, %s16_s10 }
   0x5   :  { %p254_p0 = scmp.ne.s32.totalorder %s16_s10, %s253_s11  ;;  %p259_p2 = scmp.lt.s32.totalorder %s253_s11, %s253_s11 }
   0x7   :  { %p260_p3 = por %p259_p2, %p258_p1 }
   0x9   :  { %p261_p4 = pnand %p260_p3, %p254_p0 }
   0xb   :  { %264 = shalt.err (!%p261_p4)
}
   0xc   :  { %s312_s12 = smov 64   ;;  %s313_s13 = smov 4  }
   0xd   :  { %21 = dma.hbm_to_vmem [thread:$0]  %s351_s0, 128, %s16_s10, [#allocation3], %s312_s12, %s312_s12, %s313_s13  }
   0xe   :  { %s314_s16 = smov [#allocation5]  }
   0xf   :  { %s27_s17 = sshll.u32 %s314_s16, 4  ;;  %s28_s17 = int_to_ptr.vmem [resolvable:$true] %s27_s17 }
  0x10   :  { %s273_s18 = scalar_lea.vmem %s28_s17, 1024  ;;  %p278_p6 = scmp.lt.s32.totalorder %s28_s17, %s28_s17 }
  0x11   :  { %p274_p5 = scmp.ne.s32.totalorder %s28_s17, %s273_s18  ;;  %p279_p7 = scmp.lt.s32.totalorder %s273_s18, %s273_s18 }
  0x13   :  { %p280_p8 = por %p279_p7, %p278_p6 }
  0x15   :  { %p281_p9 = pnand %p280_p8, %p274_p5 }
  0x17   :  { %284 = shalt.err (!%p281_p9)
}
  0x18   :  { %33 = dma.hbm_to_vmem [thread:$0]  %s352_s1, 1024, %s28_s17, [#allocation6], %s312_s12, %s312_s12, %s313_s13  }
  0x19   :  { %305 = dma.done.wait [#allocation3], 128  }
  0x1a   :  { %306 = vsyncadd [#allocation3], 4294967168 }
  0x1b   :  { %307 = dma.done.wait [#allocation6], 1024  }
  0x1c   :  { %308 = vsyncadd [#allocation6], 4294966272  ;;  %v315_v0 = vmov 0.0   ;;  %vm316_vm0 = vmmov 0   ;;  %v236_v1 = vld [vmem:[#allocation5 + $0x38] sm:$0xff]   ;;  %v237_v2 = vld [vmem:[#allocation5 + $0x30] sm:$0xff]  }
  0x1d   :  { %209 = vmatprep.subr.bf16.mxu0 %v315_v0  ;;  %225 = vmatprep.mubr.msk.bf16.mxu0 %vm316_vm0, %v315_v0  ;;  %v238_v3 = vld [vmem:[#allocation5 + $0x28] sm:$0xff]   ;;  %v239_v4 = vld [vmem:[#allocation5 + $0x20] sm:$0xff]   ;;  %v240_v5 = vld [vmem:[#allocation5 + $0x18] sm:$0xff]   ;;  %s317_s0 = smov [#allocation7]  }
  0x1e   :  { %210 = vmatpush3.bf16.msra.mxu0 %v236_v1  ;;  %v241_v6 = vld [vmem:[#allocation5 + $0x10] sm:$0xff]   ;;  %v242_v7 = vld [vmem:[#allocation5 + $0x8] sm:$0xff]   ;;  %v243_v8 = vld [vmem:[#allocation5] sm:$0xff]   ;;  %s169_s1 = sshll.u32 %s317_s0, 4  ;;  %s170_s1 = int_to_ptr.vmem [resolvable:$true] %s169_s1 }
  0x1f   :  { %211 = vmatprep.subr.bf16.mxu0 %v315_v0  ;;  %v244_v9 = vld [vmem:[#allocation2] sm:$0xff]   ;;  %s285_s21 = scalar_lea.vmem %s170_s1, 128  ;;  %p290_p11 = scmp.lt.s32.totalorder %s170_s1, %s170_s1 }
  0x20   :  { %p286_p10 = scmp.ne.s32.totalorder %s170_s1, %s285_s21  ;;  %p291_p12 = scmp.lt.s32.totalorder %s285_s21, %s285_s21 }
  0x22   :  { %212 = vmatpush3.bf16.msra.mxu0 %v237_v2  ;;  %p292_p13 = por %p291_p12, %p290_p11 }
  0x23   :  { %213 = vmatprep.subr.bf16.mxu0 %v315_v0 }
  0x24   :  { %p293_p0 = pnand %p292_p13, %p286_p10 }
  0x26   :  { %214 = vmatpush3.bf16.msra.mxu0 %v238_v3 }
  0x27   :  { %215 = vmatprep.subr.bf16.mxu0 %v315_v0 }
  0x2a   :  { %216 = vmatpush3.bf16.msra.mxu0 %v239_v4 }
  0x2b   :  { %217 = vmatprep.subr.bf16.mxu0 %v315_v0 }
  0x2e   :  { %218 = vmatpush3.bf16.msra.mxu0 %v240_v5 }
  0x2f   :  { %219 = vmatprep.subr.bf16.mxu0 %v315_v0 }
  0x32   :  { %220 = vmatpush3.bf16.msra.mxu0 %v241_v6 }
  0x33   :  { %221 = vmatprep.subr.bf16.mxu0 %v315_v0 }
  0x36   :  { %222 = vmatpush3.bf16.msra.mxu0 %v242_v7 }
  0x37   :  { %223 = vmatprep.subr.bf16.mxu0 %v315_v0 }
  0x3a   :  { %224 = vmatpush3.bf16.msra.mxu0 %v243_v8 }
  0x3d   :  { %226 = vmatmul.mubr.bf16.vlgmr.msra.gmra.mxu0 %v244_v9 }
  0xfd   :  { %v147_v10 = vpop.f32.mrf.mxu0 }
  0xff   :  { %v227_v11 = vpop.f32.mrf.mxu0 }
 0x101   :  { %v150_v12 = vpop.f32.mrf.mxu0 }
 0x102   :  { %v198_v13 = vpack.c.bf16 %v150_v12, %v147_v10 }
 0x103   :  { %v228_v14 = vpop.f32.mrf.mxu0 }
 0x104   :  { %199 = vst [vmem:[#allocation7] sm:$0xff] %v198_v13  }
 0x105   :  { %296 = shalt.err (!%p293_p0)
}
 0x106   :  { %175 = dma.vmem_to_hbm [thread:$0]  %s170_s1, 128, %s353_s2, [#allocation4], %s312_s12, %s312_s12, %s313_s13  }
 0x107   :  { %309 = dma.done.wait [#allocation4], 128  }
 0x108   :  { %310 = vsyncadd [#allocation4], 4294967168 }
 0x109   :  { %179 = vsyncpa [#allocation3], 1 }
 0x10a   :  { %180 = vsyncpa [#allocation6], 1 }
 0x10b   :  { %181 = vsyncpa [#allocation4], 1 }

</bundles_post_ra>
